<compile_context>
chip_gen: v5e
topology: v5e:2x2
jax: 0.10.0
libtpu: 0.0.40
codegen_flags: <defaults>
</compile_context>

<pallas_src>
import math

import jax
import jax.numpy as jnp
from jax.experimental import pallas as pl
from jax.experimental.pallas import tpu as pltpu


def _gelu_tanh(x):
    # PyTorch nn.GELU(approximate='tanh'), evaluated in f32.
    c = math.sqrt(2.0 / math.pi)
    return 0.5 * x * (1.0 + jnp.tanh(c * (x + 0.044715 * x * x * x)))


def caption_embedder_kernel(mask_ref, cap_ref, unc_ref, w1_ref, w2_ref, out_ref):
    """One grid step = one (R, C) row block; R = bblk * T rows through the MXU.

    mask_ref: (R, 1) f32   -- >0 means drop this row's caption (use uncond).
    cap_ref:  (R, C) native caption dtype (e.g. f32).
    unc_ref:  (R, C) native dtype; uncond_embedding pre-tiled per block row.
    w1_ref:   (C, H) bf16  = fc1.weight.T
    w2_ref:   (H, H) bf16  = fc2.weight.T
    out_ref:  (R, H) out_dtype
    """
    # token_drop: where(drop, uncond, caption).  (R,1) mask broadcasts in the
    # select itself -- no materialized (R,C) temp.
    x = jnp.where(mask_ref[...] > 0.0, unc_ref[...], cap_ref[...])
    x = x.astype(w1_ref.dtype)                                     # bf16 for the MXU

    h = jnp.dot(x, w1_ref[...], preferred_element_type=jnp.float32)     # f32 acc
    h = _gelu_tanh(h)                                                    # f32
    y = jnp.dot(h.astype(w2_ref.dtype), w2_ref[...],
                preferred_element_type=jnp.float32)                      # f32 acc

    out_ref[...] = y.astype(out_ref.dtype)


def _default_tuning():
    """(target_rows, vmem_cap_bytes) per TPU generation."""
    try:
        kind = jax.devices()[0].device_kind.lower()
    except Exception:
        kind = ""
    if "v7" in kind:
        return 512, 56 * 1024 * 1024      # 64 MiB VMEM / TC on v7x
    return 1024, 96 * 1024 * 1024         # v5e / v6e: 128 MiB VMEM


def _choose_bblk(B, T, target_rows):
    """Pick batches-per-block so that rows = bblk*T is sublane-aligned, prefers a
    divisor of B (avoids the out[:B] tail copy) and yields >= 2 grid blocks."""
    cap = max(1, min(B, max(1, target_rows // max(T, 1))))

    def _ok(bb):
        return (bb * T) % 8 == 0

    bblk = None
    for bb in range(cap, 0, -1):          # largest divisor of B first
        if B % bb == 0 and _ok(bb):
            bblk = bb
            break
    if bblk is None:
        for bb in range(cap, 0, -1):      # allow padding B if no divisor works
            if _ok(bb):
                bblk = bb
                break
    if bblk is None:
        # TODO(synk): T not sublane-alignable within the row budget; fall back to a
        # single full-batch block (legal because block dims == full array dims).
        return B
    # Make sure the "parallel" grid axis has >= 2 blocks (feeds both v7x TCs).
    if bblk >= B and B > 1:
        for bb in range(B // 2, 0, -1):
            if B % bb == 0 and _ok(bb):
                return bb
    return bblk


def caption_embedder_forward(caption, uncond_embedding, w1, w2,
                             uncond_prob, train, force_drop_ids=None, key=None,
                             compute_dtype=jnp.bfloat16, out_dtype=None,
                             target_rows=None, vmem_cap_bytes=None):
    """caption: (B, T, C). w1: (C, H), w2: (H, H) (transposed from PyTorch (out,in)).

    Returns (B, T, H) in out_dtype (defaults to caption.dtype)."""
    B, T, C = caption.shape
    H = w1.shape[1]
    if out_dtype is None:
        out_dtype = caption.dtype

    d_rows, d_vmem = _default_tuning()
    if target_rows is None:
        target_rows = d_rows
    if vmem_cap_bytes is None:
        vmem_cap_bytes = d_vmem

    # ---- drop-id generation (randomness stays in plain JAX, outside the kernel)
    use_dropout = uncond_prob > 0
    if (train and use_dropout) or (force_drop_ids is not None):
        if force_drop_ids is None:
            assert key is not None
            drop_ids = (jax.random.uniform(key, (B,)) < uncond_prob).astype(jnp.int32)
        else:
            drop_ids = (force_drop_ids == 1).astype(jnp.int32)
    else:
        drop_ids = jnp.zeros((B,), jnp.int32)

    # ---- row blocking
    bblk = _choose_bblk(B, T, target_rows)
    n_blocks = pl.cdiv(B, bblk)
    B_pad = n_blocks * bblk
    R = bblk * T                      # rows per grid step
    rows_pad = B_pad * T

    # Weights cast once to bf16 (small, resident).  Caption stays in native dtype.
    # TODO(synk): cache the bf16 weight casts across calls in the caller.
    w1c = w1.astype(compute_dtype)
    w2c = w2.astype(compute_dtype)

    # Flatten to rows (metadata-only reshape: no HBM pass).
    cap2 = caption.reshape(B * T, C)
    mask = jnp.repeat(drop_ids.astype(jnp.float32), T).reshape(B * T, 1)
    if B_pad != B:
        pad_rows = (B_pad - B) * T
        cap2 = jnp.pad(cap2, ((0, pad_rows), (0, 0)))
        mask = jnp.pad(mask, ((0, pad_rows), (0, 0)))
    # uncond pre-tiled to exactly one row block (unc_tiled[r] == uncond[r % T]).
    unc_tiled = jnp.tile(uncond_embedding.astype(caption.dtype), (bblk, 1))

    in_bytes = jnp.dtype(caption.dtype).itemsize
    c_bytes = jnp.dtype(compute_dtype).itemsize
    o_bytes = jnp.dtype(out_dtype).itemsize

    # VMEM budget: double-buffered caption/mask/output blocks + single-buffered
    # resident operands (weights, tiled uncond).
    block_bytes = (2 * R * C * in_bytes            # caption block
                   + 2 * R * 4                     # mask block
                   + 2 * R * H * o_bytes           # output block
                   + R * C * in_bytes              # uncond (single-buffered)
                   + (C * H + H * H) * c_bytes)    # weights (single-buffered)
    vmem_limit = int(max(16 * 1024 * 1024,
                         min(vmem_cap_bytes, int(1.5 * block_bytes) + (2 << 20))))

    cost = pl.CostEstimate(
        flops=2 * rows_pad * (C * H + H * H),
        transcendentals=rows_pad * H,
        bytes_accessed=(rows_pad * C * in_bytes + rows_pad * 4
                        + R * C * in_bytes + (C * H + H * H) * c_bytes
                        + rows_pad * H * o_bytes),
    )

    def _make(single_buffer_consts):
        if single_buffer_consts and hasattr(pl, "Buffered"):
            def const_spec(bs, im):
                return pl.BlockSpec(bs, im, pipeline_mode=pl.Buffered(1))
        else:
            def const_spec(bs, im):
                return pl.BlockSpec(bs, im)
        return pl.pallas_call(
            caption_embedder_kernel,
            out_shape=jax.ShapeDtypeStruct((rows_pad, H), out_dtype),
            grid=(n_blocks,),
            in_specs=[
                pl.BlockSpec((R, 1), lambda i: (i, 0)),   # per-row drop mask
                pl.BlockSpec((R, C), lambda i: (i, 0)),   # caption rows (native)
                const_spec((R, C), lambda i: (0, 0)),     # tiled uncond (resident)
                const_spec((C, H), lambda i: (0, 0)),     # fc1 weight (C,H) bf16
                const_spec((H, H), lambda i: (0, 0)),     # fc2 weight (H,H) bf16
            ],
            out_specs=pl.BlockSpec((R, H), lambda i: (i, 0)),
            compiler_params=pltpu.CompilerParams(
                dimension_semantics=("parallel",),
                vmem_limit_bytes=vmem_limit),
            cost_estimate=cost,
        )

    try:
        out = _make(True)(mask, cap2, unc_tiled, w1c, w2c)
    except Exception:
        # Fallback if single-buffer pipeline_mode is unsupported in this jax build.
        out = _make(False)(mask, cap2, unc_tiled, w1c, w2c)

    out = out[:B * T] if rows_pad != B * T else out
    return out.reshape(B, T, H)


def caption_embedder_reference(caption, uncond_embedding, w1, w2, drop_ids,
                               compute_dtype=jnp.bfloat16):
    """Pure-JAX reference mirroring the kernel's bf16-matmul / f32-accum numerics."""
    cap = jnp.where(drop_ids[:, None, None] == 1, uncond_embedding[None], caption)
    cap = cap.astype(compute_dtype)
    h = jnp.einsum('btc,ch->bth', cap, w1.astype(compute_dtype),
                   preferred_element_type=jnp.float32)
    h = _gelu_tanh(h)
    y = jnp.einsum('bth,hk->btk', h.astype(compute_dtype), w2.astype(compute_dtype),
                   preferred_element_type=jnp.float32)
    return y


if __name__ == "__main__":
    # Small shapes consistent with the module: batch=2, token_num=8,
    # in_channels=32, hidden_size=32.
    B, T, C, H = 2, 8, 32, 32
    uncond_prob = 0.1

    key = jax.random.PRNGKey(0)
    k_cap, k_unc, k_w1, k_w2, k_drop = jax.random.split(key, 5)

    caption = jax.random.normal(k_cap, (B, T, C), jnp.float32)
    # uncond_embedding ~ randn(token_num, in_channels) / sqrt(in_channels)
    uncond_embedding = jax.random.normal(k_unc, (T, C), jnp.float32) / math.sqrt(C)
    # nn.Linear(bias=False) weights, stored here already transposed: (in, out)
    w1 = jax.random.normal(k_w1, (C, H), jnp.float32) / math.sqrt(C)
    w2 = jax.random.normal(k_w2, (H, H), jnp.float32) / math.sqrt(H)

    # Deterministic classifier-free-guidance drop pattern via force_drop_ids.
    force_drop_ids = jnp.array([1, 0], dtype=jnp.int32)

    out = caption_embedder_forward(
        caption, uncond_embedding, w1, w2,
        uncond_prob=uncond_prob, train=True, force_drop_ids=force_drop_ids)
    out = jax.block_until_ready(out)

    ref = caption_embedder_reference(caption, uncond_embedding, w1, w2,
                                     force_drop_ids)
    assert out.shape == (B, T, H)
    assert jnp.allclose(out, ref, atol=1e-2, rtol=1e-2), "mismatch vs reference"

    # train=True random-drop path (randomness generated in JAX, outside the kernel).
    out2 = caption_embedder_forward(
        caption, uncond_embedding, w1, w2,
        uncond_prob=uncond_prob, train=True, force_drop_ids=None, key=k_drop)
    jax.block_until_ready(out2)

    # bf16-output path (halves output VMEM / writeback; f32 accum kept in-kernel).
    out3 = caption_embedder_forward(
        caption, uncond_embedding, w1, w2,
        uncond_prob=uncond_prob, train=False, force_drop_ids=force_drop_ids,
        out_dtype=jnp.bfloat16)
    out3 = jax.block_until_ready(out3)
    assert jnp.allclose(out3.astype(jnp.float32), ref, atol=5e-2, rtol=5e-2)

    print("KERNEL_OK")
</pallas_src>

<mosaic_0001>
module attributes {stable_mosaic.version = 11 : i64} {
  func.func @caption_embedder_kernel(%arg0: i32, %arg1: memref<8x1xf32, #tpu.memory_space<vmem>>, %arg2: memref<8x32xf32, #tpu.memory_space<vmem>>, %arg3: memref<8x32xf32, #tpu.memory_space<vmem>>, %arg4: memref<32x32xbf16, #tpu.memory_space<vmem>>, %arg5: memref<32x32xbf16, #tpu.memory_space<vmem>>, %arg6: memref<8x32xf32, #tpu.memory_space<vmem>>) attributes {dimension_semantics = [#tpu.dimension_semantics<parallel>], iteration_bounds = array<i64: 2>, scalar_prefetch = 0 : i64, scratch_operands = 0 : i64, tpu.core_type = #tpu.core_type<tc>, window_params = [{transform_indices = @transform_0, window_bounds = array<i64: 8, 1>}, {transform_indices = @transform_1, window_bounds = array<i64: 8, 32>}, {pipeline_mode = #tpu.pipeline_mode<synchronous>, transform_indices = @transform_2, window_bounds = array<i64: 8, 32>}, {pipeline_mode = #tpu.pipeline_mode<synchronous>, transform_indices = @transform_3, window_bounds = array<i64: 32, 32>}, {pipeline_mode = #tpu.pipeline_mode<synchronous>, transform_indices = @transform_4, window_bounds = array<i64: 32, 32>}, {transform_indices = @transform_5, window_bounds = array<i64: 8, 32>}]} {
    %c0 = arith.constant 0 : index
    %c0_0 = arith.constant 0 : index
    %0 = vector.load %arg1[%c0, %c0_0] : memref<8x1xf32, #tpu.memory_space<vmem>>, vector<8x1xf32>
    %cst = arith.constant 0.000000e+00 : f32
    %1 = vector.broadcast %cst : f32 to vector<8x1xf32>
    %2 = arith.cmpf ogt, %0, %1 : vector<8x1xf32>
    %c0_1 = arith.constant 0 : index
    %c0_2 = arith.constant 0 : index
    %3 = vector.load %arg3[%c0_1, %c0_2] : memref<8x32xf32, #tpu.memory_space<vmem>>, vector<8x32xf32>
    %c0_3 = arith.constant 0 : index
    %c0_4 = arith.constant 0 : index
    %4 = vector.load %arg2[%c0_3, %c0_4] : memref<8x32xf32, #tpu.memory_space<vmem>>, vector<8x32xf32>
    %5 = vector.shape_cast %2 : vector<8x1xi1> to vector<8x1xi1>
    %6 = vector.broadcast %5 : vector<8x1xi1> to vector<8x32xi1>
    %7 = arith.select %6, %3, %4 : vector<8x32xi1>, vector<8x32xf32>
    %8 = arith.truncf %7 : vector<8x32xf32> to vector<8x32xbf16>
    %c0_5 = arith.constant 0 : index
    %c0_6 = arith.constant 0 : index
    %9 = vector.load %arg4[%c0_5, %c0_6] : memref<32x32xbf16, #tpu.memory_space<vmem>>, vector<32x32xbf16>
    %cst_7 = arith.constant dense<0.000000e+00> : vector<8x32xf32>
    %10 = tpu.matmul %8, %9, %cst_7 {dimension_numbers = #tpu.dot_dimension_numbers<[1], [0], [0], [1], [0, 0, 1, 1], [], []>} : vector<8x32xbf16>, vector<32x32xbf16>, vector<8x32xf32> -> vector<8x32xf32>
    %cst_8 = arith.constant 5.000000e-01 : f32
    %11 = vector.broadcast %cst_8 : f32 to vector<8x32xf32>
    %12 = arith.mulf %11, %10 : vector<8x32xf32>
    %cst_9 = arith.constant 4.471500e-02 : f32
    %13 = vector.broadcast %cst_9 : f32 to vector<8x32xf32>
    %14 = arith.mulf %13, %10 : vector<8x32xf32>
    %15 = arith.mulf %14, %10 : vector<8x32xf32>
    %16 = arith.mulf %15, %10 : vector<8x32xf32>
    %17 = arith.addf %10, %16 : vector<8x32xf32>
    %cst_10 = arith.constant 0.797884583 : f32
    %18 = vector.broadcast %cst_10 : f32 to vector<8x32xf32>
    %19 = arith.mulf %18, %17 : vector<8x32xf32>
    %20 = math.tanh %19 : vector<8x32xf32>
    %cst_11 = arith.constant 1.000000e+00 : f32
    %21 = vector.broadcast %cst_11 : f32 to vector<8x32xf32>
    %22 = arith.addf %21, %20 : vector<8x32xf32>
    %23 = arith.mulf %12, %22 : vector<8x32xf32>
    %24 = arith.truncf %23 : vector<8x32xf32> to vector<8x32xbf16>
    %c0_12 = arith.constant 0 : index
    %c0_13 = arith.constant 0 : index
    %25 = vector.load %arg5[%c0_12, %c0_13] : memref<32x32xbf16, #tpu.memory_space<vmem>>, vector<32x32xbf16>
    %cst_14 = arith.constant dense<0.000000e+00> : vector<8x32xf32>
    %26 = tpu.matmul %24, %25, %cst_14 {dimension_numbers = #tpu.dot_dimension_numbers<[1], [0], [0], [1], [0, 0, 1, 1], [], []>} : vector<8x32xbf16>, vector<32x32xbf16>, vector<8x32xf32> -> vector<8x32xf32>
    %c0_15 = arith.constant 0 : index
    %c0_16 = arith.constant 0 : index
    %27 = vector.load %arg6[%c0_15, %c0_16] : memref<8x32xf32, #tpu.memory_space<vmem>>, vector<8x32xf32>
    tpu.vector_store %arg6[%c0_15, %c0_16], %26 {strides = array<i32>} : memref<8x32xf32, #tpu.memory_space<vmem>>, vector<8x32xf32>,
    return
  }
  func.func @transform_0(%arg0: i32) -> (i32, i32) {
    %c0_i32 = arith.constant 0 : i32
    %c0_i32_0 = arith.constant 0 : i32
    return %arg0, %c0_i32 : i32, i32
  }
  func.func @transform_1(%arg0: i32) -> (i32, i32) {
    %c0_i32 = arith.constant 0 : i32
    %c0_i32_0 = arith.constant 0 : i32
    return %arg0, %c0_i32 : i32, i32
  }
  func.func @transform_2(%arg0: i32) -> (i32, i32) {
    %c0_i32 = arith.constant 0 : i32
    %c0_i32_0 = arith.constant 0 : i32
    %c0_i32_1 = arith.constant 0 : i32
    return %c0_i32, %c0_i32_0 : i32, i32
  }
  func.func @transform_3(%arg0: i32) -> (i32, i32) {
    %c0_i32 = arith.constant 0 : i32
    %c0_i32_0 = arith.constant 0 : i32
    %c0_i32_1 = arith.constant 0 : i32
    return %c0_i32, %c0_i32_0 : i32, i32
  }
  func.func @transform_4(%arg0: i32) -> (i32, i32) {
    %c0_i32 = arith.constant 0 : i32
    %c0_i32_0 = arith.constant 0 : i32
    %c0_i32_1 = arith.constant 0 : i32
    return %c0_i32, %c0_i32_0 : i32, i32
  }
  func.func @transform_5(%arg0: i32) -> (i32, i32) {
    %c0_i32 = arith.constant 0 : i32
    %c0_i32_0 = arith.constant 0 : i32
    return %arg0, %c0_i32 : i32, i32
  }
}

module attributes {stable_mosaic.version = 11 : i64} {
  func.func @caption_embedder_kernel(%arg0: i32, %arg1: memref<8x1xf32, #tpu.memory_space<vmem>>, %arg2: memref<8x32xf32, #tpu.memory_space<vmem>>, %arg3: memref<8x32xf32, #tpu.memory_space<vmem>>, %arg4: memref<32x32xbf16, #tpu.memory_space<vmem>>, %arg5: memref<32x32xbf16, #tpu.memory_space<vmem>>, %arg6: memref<8x32xf32, #tpu.memory_space<vmem>>) attributes {dimension_semantics = [#tpu.dimension_semantics<parallel>], iteration_bounds = array<i64: 2>, scalar_prefetch = 0 : i64, scratch_operands = 0 : i64, tpu.core_type = #tpu.core_type<tc>, window_params = [{transform_indices = @transform_0, window_bounds = array<i64: 8, 1>}, {transform_indices = @transform_1, window_bounds = array<i64: 8, 32>}, {pipeline_mode = #tpu.pipeline_mode<synchronous>, transform_indices = @transform_2, window_bounds = array<i64: 8, 32>}, {pipeline_mode = #tpu.pipeline_mode<synchronous>, transform_indices = @transform_3, window_bounds = array<i64: 32, 32>}, {pipeline_mode = #tpu.pipeline_mode<synchronous>, transform_indices = @transform_4, window_bounds = array<i64: 32, 32>}, {transform_indices = @transform_5, window_bounds = array<i64: 8, 32>}]} {
    %c0 = arith.constant 0 : index
    %c0_0 = arith.constant 0 : index
    %0 = vector.load %arg1[%c0, %c0_0] : memref<8x1xf32, #tpu.memory_space<vmem>>, vector<8x1xf32>
    %cst = arith.constant 0.000000e+00 : f32
    %1 = vector.broadcast %cst : f32 to vector<8x1xf32>
    %2 = arith.cmpf ogt, %0, %1 : vector<8x1xf32>
    %c0_1 = arith.constant 0 : index
    %c0_2 = arith.constant 0 : index
    %3 = vector.load %arg3[%c0_1, %c0_2] : memref<8x32xf32, #tpu.memory_space<vmem>>, vector<8x32xf32>
    %c0_3 = arith.constant 0 : index
    %c0_4 = arith.constant 0 : index
    %4 = vector.load %arg2[%c0_3, %c0_4] : memref<8x32xf32, #tpu.memory_space<vmem>>, vector<8x32xf32>
    %5 = vector.shape_cast %2 : vector<8x1xi1> to vector<8x1xi1>
    %6 = vector.broadcast %5 : vector<8x1xi1> to vector<8x32xi1>
    %7 = arith.select %6, %3, %4 : vector<8x32xi1>, vector<8x32xf32>
    %8 = arith.truncf %7 : vector<8x32xf32> to vector<8x32xbf16>
    %c0_5 = arith.constant 0 : index
    %c0_6 = arith.constant 0 : index
    %9 = vector.load %arg4[%c0_5, %c0_6] : memref<32x32xbf16, #tpu.memory_space<vmem>>, vector<32x32xbf16>
    %cst_7 = arith.constant dense<0.000000e+00> : vector<8x32xf32>
    %10 = tpu.matmul %8, %9, %cst_7 {dimension_numbers = #tpu.dot_dimension_numbers<[1], [0], [0], [1], [0, 0, 1, 1], [], []>} : vector<8x32xbf16>, vector<32x32xbf16>, vector<8x32xf32> -> vector<8x32xf32>
    %cst_8 = arith.constant 5.000000e-01 : f32
    %11 = vector.broadcast %cst_8 : f32 to vector<8x32xf32>
    %12 = arith.mulf %11, %10 : vector<8x32xf32>
    %cst_9 = arith.constant 4.471500e-02 : f32
    %13 = vector.broadcast %cst_9 : f32 to vector<8x32xf32>
    %14 = arith.mulf %13, %10 : vector<8x32xf32>
    %15 = arith.mulf %14, %10 : vector<8x32xf32>
    %16 = arith.mulf %15, %10 : vector<8x32xf32>
    %17 = arith.addf %10, %16 : vector<8x32xf32>
    %cst_10 = arith.constant 0.797884583 : f32
    %18 = vector.broadcast %cst_10 : f32 to vector<8x32xf32>
    %19 = arith.mulf %18, %17 : vector<8x32xf32>
    %20 = math.tanh %19 : vector<8x32xf32>
    %cst_11 = arith.constant 1.000000e+00 : f32
    %21 = vector.broadcast %cst_11 : f32 to vector<8x32xf32>
    %22 = arith.addf %21, %20 : vector<8x32xf32>
    %23 = arith.mulf %12, %22 : vector<8x32xf32>
    %24 = arith.truncf %23 : vector<8x32xf32> to vector<8x32xbf16>
    %c0_12 = arith.constant 0 : index
    %c0_13 = arith.constant 0 : index
    %25 = vector.load %arg5[%c0_12, %c0_13] : memref<32x32xbf16, #tpu.memory_space<vmem>>, vector<32x32xbf16>
    %cst_14 = arith.constant dense<0.000000e+00> : vector<8x32xf32>
    %26 = tpu.matmul %24, %25, %cst_14 {dimension_numbers = #tpu.dot_dimension_numbers<[1], [0], [0], [1], [0, 0, 1, 1], [], []>} : vector<8x32xbf16>, vector<32x32xbf16>, vector<8x32xf32> -> vector<8x32xf32>
    %c0_15 = arith.constant 0 : index
    %c0_16 = arith.constant 0 : index
    %27 = vector.load %arg6[%c0_15, %c0_16] : memref<8x32xf32, #tpu.memory_space<vmem>>, vector<8x32xf32>
    tpu.vector_store %arg6[%c0_15, %c0_16], %26 {strides = array<i32>} : memref<8x32xf32, #tpu.memory_space<vmem>>, vector<8x32xf32>,
    return
  }
  func.func @transform_0(%arg0: i32) -> (i32, i32) {
    %c0_i32 = arith.constant 0 : i32
    %c0_i32_0 = arith.constant 0 : i32
    return %arg0, %c0_i32 : i32, i32
  }
  func.func @transform_1(%arg0: i32) -> (i32, i32) {
    %c0_i32 = arith.constant 0 : i32
    %c0_i32_0 = arith.constant 0 : i32
    return %arg0, %c0_i32 : i32, i32
  }
  func.func @transform_2(%arg0: i32) -> (i32, i32) {
    %c0_i32 = arith.constant 0 : i32
    %c0_i32_0 = arith.constant 0 : i32
    %c0_i32_1 = arith.constant 0 : i32
    return %c0_i32, %c0_i32_0 : i32, i32
  }
  func.func @transform_3(%arg0: i32) -> (i32, i32) {
    %c0_i32 = arith.constant 0 : i32
    %c0_i32_0 = arith.constant 0 : i32
    %c0_i32_1 = arith.constant 0 : i32
    return %c0_i32, %c0_i32_0 : i32, i32
  }
  func.func @transform_4(%arg0: i32) -> (i32, i32) {
    %c0_i32 = arith.constant 0 : i32
    %c0_i32_0 = arith.constant 0 : i32
    %c0_i32_1 = arith.constant 0 : i32
    return %c0_i32, %c0_i32_0 : i32, i32
  }
  func.func @transform_5(%arg0: i32) -> (i32, i32) {
    %c0_i32 = arith.constant 0 : i32
    %c0_i32_0 = arith.constant 0 : i32
    return %arg0, %c0_i32 : i32, i32
  }
}

</mosaic_0001>

<bundles_post_ra>
// kernel: tpu_custom_call.1
= control target key start
LH: loop header
LB: loop body
LE: loop exit
PB: predicated region body
PF: predicated region fallthrough
CT: control target
= control target key end

     0   :  { %10 = vsyncpa [#allocation3], 0  ;;  %s933_s0 = inlined_call_operand.vmem [shape: f32[16,1], index: 0, kind: input, shape index: {}]   ;;  %s934_s1 = inlined_call_operand.vmem [shape: f32[16,32], index: 1, kind: input, shape index: {}]   ;;  %s935_s2 = inlined_call_operand.hbm [shape: f32[8,32], index: 2, kind: input, shape index: {}]   ;;  %s936_s3 = inlined_call_operand.hbm [shape: bf16[32,32], index: 3, kind: input, shape index: {}]   ;;  %s937_s4 = inlined_call_operand.hbm [shape: bf16[32,32], index: 4, kind: input, shape index: {}]   ;;  %s938_s5 = inlined_call_operand.hbm [shape: f32[16,32], index: 5, kind: output, shape index: {}]  }
   0x1   :  { %11 = vsyncpa [#allocation6], 0 }
   0x2   :  { %12 = vsyncpa [#allocation4], 0 }
   0x3   :  { %14 = vsyncpa [#allocation4 + $0x1], 0  ;;  %s804_s18 = smov 0   ;;  %s806_s19 = smov 0  }
   0x4   :  { %s808_s20 = smov 0   ;;  %s810_s21 = smov 0  }
   0x5 LB: > { %s825_s22 = sadd.s32 4294967295, %s766_s21   ;;  %s491_s23 = sadd.s32 4294967294, %s766_s21   ;;  %s766_s21 = sphi %s810_s21, %s946_s21   ;;  %s762_s20 = sphi %s808_s20, %s945_s20   ;;  %s758_s19 = sphi %s806_s19, %s944_s19   ;;  %s754_s18 = sphi %s804_s18, %s943_s18  }
   0x6   : > { %s829_s24 = sadd.s32 1, %s766_s21   ;;  %s142_s25 = sadd.s32 1, %s762_s20 }
   0x7   : > { %s139_s26 = ssub.s32 %s766_s21, %s829_s24  ;;  %p152_p0 = scmp.ne.s32.totalorder %s762_s20, %s758_s19 }
   0x8   : > { %p140_p1 = scmp.eq.s32.totalorder %s139_s26, 0  ;;  %p153_p2 = scmp.eq.s32.totalorder %s825_s22, 1 }
   0x9   : > { %p158_p3 = scmp.ne.s32.totalorder %s758_s19, %s754_s18  ;;  %p159_p4 = scmp.eq.s32.totalorder %s491_s23, 1 }
   0xa   : > { %s840_s27 = scalar_select %p140_p1, %s762_s20, %s142_s25  }
   0xb   : > { %p842_p5 = por %p153_p2, %p152_p0  ;;  %p846_p6 = por %p159_p4, %p158_p3 }
   0xc   : > { %p492_p7 = scmp.ge.s32.totalorder %s766_s21, 1  ;;  %p166_p8 = scmp.lt.s32.totalorder %s766_s21, 3 }
   0xd   : > { %p558_p9 = scmp.eq.s32.totalorder %s825_s22, 0  ;;  %s189_s8 = sshll.u32 %s936_s3, 4  ;;  %s190_s8 = int_to_ptr.hbm [resolvable:$true] %s189_s8 }
   0xe   : > { %p853_p10 = pnand %p492_p7, %p166_p8  ;;  %s768_s9 = smov [#allocation5]  }
   0xf   : > { %s191_s10 = sshll.u32 %s768_s9, 4  ;;  %s178_s14 = sshll.u32 %s935_s2, 4  ;;  %s192_s10 = int_to_ptr.vmem [resolvable:$true] %s191_s10  ;;  %s179_s14 = int_to_ptr.hbm [resolvable:$true] %s178_s14 }
  0x10   : > { %p544_p11 = pneg %p853_p10  ;;  %s769_s15 = smov 64  }
  0x11   : > { %s770_s16 = smov 4   ;;  %s771_s17 = smov [#allocation2]  }
  0x12   : > { %p864_p12 = pnand %p558_p9, %p544_p11  ;;  %s180_s23 = sshll.u32 %s771_s17, 4  ;;  %s181_s23 = int_to_ptr.vmem [resolvable:$true] %s180_s23 }
  0x13   : > { %s203_s6 = sshll.u32 %s937_s4, 4  ;;  %s772_s7 = smov [#allocation7]   ;;  %s204_s6 = int_to_ptr.hbm [resolvable:$true] %s203_s6 }
  0x14   : > { %550 = dma.hbm_to_vmem [thread:$0]  (!%p864_p12), %s190_s8, 256, %s192_s10, [#allocation6], %s769_s15, %s769_s15, %s770_s16  }
  0x15   : > { %547 = dma.hbm_to_vmem [thread:$0]  (!%p864_p12), %s179_s14, 128, %s181_s23, [#allocation3]  }
  0x16   : > { %s205_s9 = sshll.u32 %s772_s7, 4  ;;  %235 = sbr.rel (%p853_p10) target bundleno = 441 (0x1b9), region = 40  ;;  %s206_s9 = int_to_ptr.vmem [resolvable:$true] %s205_s9 }
  0x17   : > { %553 = dma.hbm_to_vmem [thread:$0]  (!%p864_p12), %s204_s6, 256, %s206_s9, [#allocation6], %s769_s15, %s769_s15, %s770_s16  }
  0x1b   : > { %741 = dma.done.wait (%p558_p9), [#allocation3], 128  }
  0x1c   : > { %743 = vsyncadd (%p558_p9), [#allocation3], 4294967168 }
  0x1d   : > { %745 = dma.done.wait (%p558_p9), [#allocation6], 512  }
  0x1e   : > { %747 = vsyncadd (%p558_p9), [#allocation6], 4294966784  ;;  %p277_p13 = scmp.lt.s32.totalorder %s825_s22, 1  ;;  %v773_v0 = vmov 0   ;;  %v527_v2 = vld [vmem:[#allocation5 + $0x8] sm:$0xff]  ;;  %v526_v4 = vld [vmem:[#allocation5] sm:$0xff] }
  0x1f   : > { %603 = vset.pattern.permute.xlu0 %v773_v0  ;;  %323 = vmatpush.bf16.msra.mxu0 %v527_v2  ;;  %v288_v5 = vld [vmem:[#allocation2] sm:$0xff]  ;;  %vm313_vm2 = vcmask 261120   ;;  %v528_v11 = vld [vmem:[#allocation7] sm:$0xff]  ;;  %s274_s16 = sand.u32 1, %s758_s19   ;;  %s523_s17 = sshll.u32 %s825_s22, 3 }
  0x20   : > { %s278_s8 = scalar_select %p277_p13, %s825_s22, 1  ;;  %v529_v10 = vld [vmem:[#allocation7 + $0x8] sm:$0xff] }
  0x21   : > { %365 = vmatpush.bf16.msra.mxu1 %v529_v10  ;;  %s501_s23 = sshll.u32 %s274_s16, 3  ;;  %s384_s6 = scalar_lea.hbm %s938_s5, %s523_s17 }
  0x22   : > { %s502_s30 = sshll.u32 %s278_s8, 3  ;;  %s276_s7 = scalar_lea.vmem [#allocation8], %s501_s23 }
  0x23   : > { %s280_s12 = scalar_lea.vmem %s933_s0, %s502_s30  ;;  %324 = vmatpush.bf16.msra.mxu0 %v526_v4  ;;  %s284_s15 = scalar_lea.vmem %s934_s1, %s502_s30 }
  0x24   : > { %v286_v1 = vld [vmem:[%s280_s12] sm:$0xff]  ;;  %s386_s9 = sshll.u32 %s276_s7, 4  ;;  %s388_s8 = sshll.u32 %s384_s6, 4  ;;  %s387_s9 = int_to_ptr.vmem [resolvable:$true] %s386_s9  ;;  %s389_s8 = int_to_ptr.hbm [resolvable:$true] %s388_s8 }
  0x25   : > { %vm287_vm0 = vcmp.gt.f32.partialorder %v286_v1, 0.0  ;;  %v289_v6 = vld [vmem:[%s284_s15] sm:$0xff]  ;;  %366 = vmatpush.bf16.msra.mxu1 %v528_v11  ;;  %s374_s30 = scalar_lea.sflag [#allocation4], %s274_s16  ;;  %s710_s10 = sshra.s32 %s389_s8, 4  ;;  %s711_s10 = int_to_ptr.hbm [resolvable:$true] %s710_s10 }
  0x26   : > { %v290_v3 = vsel %vm287_vm0, 1, %v773_v0  ;;  %s712_s11 = scalar_lea.hbm %s711_s10, 8  ;;  %s716_s13 = scalar_lea.hbm %s938_s5, 16 }
  0x27   : > { %292 = vperm.xlu0 %603, %v290_v3   ;;  %p713_p0 = scmp.ne.s32.totalorder %s711_s10, %s712_s11  ;;  %p717_p3 = scmp.lt.s32.totalorder %s711_s10, %s938_s5 }
  0x28   : > { %p718_p4 = scmp.lt.s32.totalorder %s716_s13, %s712_s11 }
  0x29   : > { %p714_p1 = pnand %p713_p0, %p842_p5 }
  0x2a   : > { %p719_p7 = por %p718_p4, %p717_p3 }
  0x2b   : > { %p715_p2 = pneg %p714_p1 }
  0x2d   : > { %p720_p8 = pnand %p719_p7, %p715_p2 }
  0x99   : > { %v293_v7 = vpop.permute.xlu0 %292 }
  0x9a   : > { %vm294_vm1 = vcmp.eq.s32.totalorder %v293_v7, 1 }
  0x9b   : > { %v295_v8 = vsel %vm294_vm1, %v288_v5, %v289_v6 }
  0x9c   : > { %v296_v9 = vpack.c.bf16 %v295_v8, %v295_v8 }
  0x9e   : > { %512 = vmatmul.msk.bf16.vlgmr.msra.gmra.mxu0 %vm313_vm2, %v296_v9 }
 0x11b   : > { %v326_v12 = vpop.f32.mrf.mxu0 }
 0x11c   : > { %v331_v13 = vmul.f32 0.044715, %v326_v12  ;;  %v330_v20 = vmul.f32 0.5, %v326_v12 }
 0x11e   : > { %v332_v14 = vmul.f32 %v331_v13, %v326_v12 }
 0x120   : > { %v333_v15 = vmul.f32 %v332_v14, %v326_v12 }
 0x122   : > { %v334_v16 = vadd.f32 %v333_v15, %v326_v12 }
 0x123   : > { %v328_v17 = vpop.f32.mrf.mxu0 }
 0x124   : > { %v335_v18 = vmul.f32 0.7978846, %v334_v16 }
 0x126   : > { %604 = vtanh.f32 %v335_v18 }
 0x12c   : > { %v605_v19 = vpop.eup %604 }
 0x12d   : > { %v337_v21 = vadd.f32 1.0, %v605_v19 }
 0x12f   : > { %v338_v22 = vmul.f32 %v337_v21, %v330_v20 }
 0x131   : > { %v339_v23 = vpack.c.bf16 %v338_v22, %v338_v22 }
 0x133   : > { %521 = vmatmul.msk.bf16.vlgmr.msra.gmra.mxu1 %vm313_vm2, %v339_v23 }
 0x1b0   : > { %v368_v24 = vpop.f32.mrf.mxu1 }
 0x1b1   : > { %372 = vst.msk [vmem:[%s276_s7] sm:$0xff] %vm313_vm2, %v368_v24 }
 0x1b2   : > { %723 = shalt.err (!%p720_p8)
}
 0x1b3   : > { %542 = dma.vmem_to_hbm [thread:$0]  (%p842_p5), %s387_s9, 128, %s389_s8, %s374_s30  }
 0x1b8   : > { %v370_v25 = vpop.f32.mrf.mxu1 }
 0x1b9 PF: > { %p564_p9 = scmp.ge.s32.totalorder %s766_s21, 2  ;;  %s400_s16 = sand.u32 1, %s754_s18  }
 0x1ba   : > { %s401_s17 = scalar_lea.sflag [#allocation4], %s400_s16 }
 0x1bb   : > { %p555_p10 = pnand %p564_p9, %p846_p6 }
 0x1bd   : > { %p556_p11 = pneg %p555_p10 }
 0x1bf   : > { %749 = dma.done.wait (%p556_p11), %s401_s17, 128  }
 0x1c0   : > { %751 = vsyncadd (%p556_p11), %s401_s17, 4294967168  ;;  %p17_p12 = scmp.ge.s32.totalorder %s829_s24, 4   ;;  %s943_s18 = smov %s758_s19 }
 0x1c1   : > { %s944_s19 = smov %s762_s20  ;;  %s945_s20 = smov %s840_s27 }
 0x1c2   : > { %s946_s21 = smov %s829_s24  ;;  %19 = sbr.rel (!%p17_p12) target bundleno = 5 (0x5), region = 91 }
 0x1c7   :  { %407 = vsyncpa [#allocation3], 1 }
 0x1c8   :  { %409 = vsyncpa [#allocation3 + $0x1], 1 }
 0x1c9   :  { %410 = vsyncpa [#allocation6], 1 }
 0x1ca   :  { %411 = vsyncpa [#allocation4], 1 }
 0x1cb   :  { %413 = vsyncpa [#allocation4 + $0x1], 1 }

// kernel: tpu_custom_call.1
= control target key start
LH: loop header
LB: loop body
LE: loop exit
PB: predicated region body
PF: predicated region fallthrough
CT: control target
= control target key end

     0   :  { %10 = vsyncpa [#allocation3], 0  ;;  %s933_s0 = inlined_call_operand.vmem [shape: f32[16,1], index: 0, kind: input, shape index: {}]   ;;  %s934_s1 = inlined_call_operand.vmem [shape: f32[16,32], index: 1, kind: input, shape index: {}]   ;;  %s935_s2 = inlined_call_operand.hbm [shape: f32[8,32], index: 2, kind: input, shape index: {}]   ;;  %s936_s3 = inlined_call_operand.hbm [shape: bf16[32,32], index: 3, kind: input, shape index: {}]   ;;  %s937_s4 = inlined_call_operand.hbm [shape: bf16[32,32], index: 4, kind: input, shape index: {}]   ;;  %s938_s5 = inlined_call_operand.hbm [shape: f32[16,32], index: 5, kind: output, shape index: {}]  }
   0x1   :  { %11 = vsyncpa [#allocation6], 0 }
   0x2   :  { %12 = vsyncpa [#allocation4], 0 }
   0x3   :  { %14 = vsyncpa [#allocation4 + $0x1], 0  ;;  %s804_s18 = smov 0   ;;  %s806_s19 = smov 0  }
   0x4   :  { %s808_s20 = smov 0   ;;  %s810_s21 = smov 0  }
   0x5 LB: > { %s825_s22 = sadd.s32 4294967295, %s766_s21   ;;  %s491_s23 = sadd.s32 4294967294, %s766_s21   ;;  %s766_s21 = sphi %s810_s21, %s946_s21   ;;  %s762_s20 = sphi %s808_s20, %s945_s20   ;;  %s758_s19 = sphi %s806_s19, %s944_s19   ;;  %s754_s18 = sphi %s804_s18, %s943_s18  }
   0x6   : > { %s829_s24 = sadd.s32 1, %s766_s21   ;;  %s142_s25 = sadd.s32 1, %s762_s20 }
   0x7   : > { %s139_s26 = ssub.s32 %s766_s21, %s829_s24  ;;  %p152_p0 = scmp.ne.s32.totalorder %s762_s20, %s758_s19 }
   0x8   : > { %p140_p1 = scmp.eq.s32.totalorder %s139_s26, 0  ;;  %p153_p2 = scmp.eq.s32.totalorder %s825_s22, 1 }
   0x9   : > { %p158_p3 = scmp.ne.s32.totalorder %s758_s19, %s754_s18  ;;  %p159_p4 = scmp.eq.s32.totalorder %s491_s23, 1 }
   0xa   : > { %s840_s27 = scalar_select %p140_p1, %s762_s20, %s142_s25  }
   0xb   : > { %p842_p5 = por %p153_p2, %p152_p0  ;;  %p846_p6 = por %p159_p4, %p158_p3 }
   0xc   : > { %p492_p7 = scmp.ge.s32.totalorder %s766_s21, 1  ;;  %p166_p8 = scmp.lt.s32.totalorder %s766_s21, 3 }
   0xd   : > { %p558_p9 = scmp.eq.s32.totalorder %s825_s22, 0  ;;  %s189_s8 = sshll.u32 %s936_s3, 4  ;;  %s190_s8 = int_to_ptr.hbm [resolvable:$true] %s189_s8 }
   0xe   : > { %p853_p10 = pnand %p492_p7, %p166_p8  ;;  %s768_s9 = smov [#allocation5]  }
   0xf   : > { %s191_s10 = sshll.u32 %s768_s9, 4  ;;  %s178_s14 = sshll.u32 %s935_s2, 4  ;;  %s192_s10 = int_to_ptr.vmem [resolvable:$true] %s191_s10  ;;  %s179_s14 = int_to_ptr.hbm [resolvable:$true] %s178_s14 }
  0x10   : > { %p544_p11 = pneg %p853_p10  ;;  %s769_s15 = smov 64  }
  0x11   : > { %s770_s16 = smov 4   ;;  %s771_s17 = smov [#allocation2]  }
  0x12   : > { %p864_p12 = pnand %p558_p9, %p544_p11  ;;  %s180_s23 = sshll.u32 %s771_s17, 4  ;;  %s181_s23 = int_to_ptr.vmem [resolvable:$true] %s180_s23 }
  0x13   : > { %s203_s6 = sshll.u32 %s937_s4, 4  ;;  %s772_s7 = smov [#allocation7]   ;;  %s204_s6 = int_to_ptr.hbm [resolvable:$true] %s203_s6 }
  0x14   : > { %550 = dma.hbm_to_vmem [thread:$0]  (!%p864_p12), %s190_s8, 256, %s192_s10, [#allocation6], %s769_s15, %s769_s15, %s770_s16  }
  0x15   : > { %547 = dma.hbm_to_vmem [thread:$0]  (!%p864_p12), %s179_s14, 128, %s181_s23, [#allocation3]  }
  0x16   : > { %s205_s9 = sshll.u32 %s772_s7, 4  ;;  %235 = sbr.rel (%p853_p10) target bundleno = 441 (0x1b9), region = 40  ;;  %s206_s9 = int_to_ptr.vmem [resolvable:$true] %s205_s9 }
  0x17   : > { %553 = dma.hbm_to_vmem [thread:$0]  (!%p864_p12), %s204_s6, 256, %s206_s9, [#allocation6], %s769_s15, %s769_s15, %s770_s16  }
  0x1b   : > { %741 = dma.done.wait (%p558_p9), [#allocation3], 128  }
  0x1c   : > { %743 = vsyncadd (%p558_p9), [#allocation3], 4294967168 }
  0x1d   : > { %745 = dma.done.wait (%p558_p9), [#allocation6], 512  }
  0x1e   : > { %747 = vsyncadd (%p558_p9), [#allocation6], 4294966784  ;;  %p277_p13 = scmp.lt.s32.totalorder %s825_s22, 1  ;;  %v773_v0 = vmov 0   ;;  %v527_v2 = vld [vmem:[#allocation5 + $0x8] sm:$0xff]  ;;  %v526_v4 = vld [vmem:[#allocation5] sm:$0xff] }
  0x1f   : > { %603 = vset.pattern.permute.xlu0 %v773_v0  ;;  %323 = vmatpush.bf16.msra.mxu0 %v527_v2  ;;  %v288_v5 = vld [vmem:[#allocation2] sm:$0xff]  ;;  %vm313_vm2 = vcmask 261120   ;;  %v528_v11 = vld [vmem:[#allocation7] sm:$0xff]  ;;  %s274_s16 = sand.u32 1, %s758_s19   ;;  %s523_s17 = sshll.u32 %s825_s22, 3 }
  0x20   : > { %s278_s8 = scalar_select %p277_p13, %s825_s22, 1  ;;  %v529_v10 = vld [vmem:[#allocation7 + $0x8] sm:$0xff] }
  0x21   : > { %365 = vmatpush.bf16.msra.mxu1 %v529_v10  ;;  %s501_s23 = sshll.u32 %s274_s16, 3  ;;  %s384_s6 = scalar_lea.hbm %s938_s5, %s523_s17 }
  0x22   : > { %s502_s30 = sshll.u32 %s278_s8, 3  ;;  %s276_s7 = scalar_lea.vmem [#allocation8], %s501_s23 }
  0x23   : > { %s280_s12 = scalar_lea.vmem %s933_s0, %s502_s30  ;;  %324 = vmatpush.bf16.msra.mxu0 %v526_v4  ;;  %s284_s15 = scalar_lea.vmem %s934_s1, %s502_s30 }
  0x24   : > { %v286_v1 = vld [vmem:[%s280_s12] sm:$0xff]  ;;  %s386_s9 = sshll.u32 %s276_s7, 4  ;;  %s388_s8 = sshll.u32 %s384_s6, 4  ;;  %s387_s9 = int_to_ptr.vmem [resolvable:$true] %s386_s9  ;;  %s389_s8 = int_to_ptr.hbm [resolvable:$true] %s388_s8 }
  0x25   : > { %vm287_vm0 = vcmp.gt.f32.partialorder %v286_v1, 0.0  ;;  %v289_v6 = vld [vmem:[%s284_s15] sm:$0xff]  ;;  %366 = vmatpush.bf16.msra.mxu1 %v528_v11  ;;  %s374_s30 = scalar_lea.sflag [#allocation4], %s274_s16  ;;  %s710_s10 = sshra.s32 %s389_s8, 4  ;;  %s711_s10 = int_to_ptr.hbm [resolvable:$true] %s710_s10 }
  0x26   : > { %v290_v3 = vsel %vm287_vm0, 1, %v773_v0  ;;  %s712_s11 = scalar_lea.hbm %s711_s10, 8  ;;  %s716_s13 = scalar_lea.hbm %s938_s5, 16 }
  0x27   : > { %292 = vperm.xlu0 %603, %v290_v3   ;;  %p713_p0 = scmp.ne.s32.totalorder %s711_s10, %s712_s11  ;;  %p717_p3 = scmp.lt.s32.totalorder %s711_s10, %s938_s5 }
  0x28   : > { %p718_p4 = scmp.lt.s32.totalorder %s716_s13, %s712_s11 }
  0x29   : > { %p714_p1 = pnand %p713_p0, %p842_p5 }
  0x2a   : > { %p719_p7 = por %p718_p4, %p717_p3 }
  0x2b   : > { %p715_p2 = pneg %p714_p1 }
  0x2d   : > { %p720_p8 = pnand %p719_p7, %p715_p2 }
  0x99   : > { %v293_v7 = vpop.permute.xlu0 %292 }
  0x9a   : > { %vm294_vm1 = vcmp.eq.s32.totalorder %v293_v7, 1 }
  0x9b   : > { %v295_v8 = vsel %vm294_vm1, %v288_v5, %v289_v6 }
  0x9c   : > { %v296_v9 = vpack.c.bf16 %v295_v8, %v295_v8 }
  0x9e   : > { %512 = vmatmul.msk.bf16.vlgmr.msra.gmra.mxu0 %vm313_vm2, %v296_v9 }
 0x11b   : > { %v326_v12 = vpop.f32.mrf.mxu0 }
 0x11c   : > { %v331_v13 = vmul.f32 0.044715, %v326_v12  ;;  %v330_v20 = vmul.f32 0.5, %v326_v12 }
 0x11e   : > { %v332_v14 = vmul.f32 %v331_v13, %v326_v12 }
 0x120   : > { %v333_v15 = vmul.f32 %v332_v14, %v326_v12 }
 0x122   : > { %v334_v16 = vadd.f32 %v333_v15, %v326_v12 }
 0x123   : > { %v328_v17 = vpop.f32.mrf.mxu0 }
 0x124   : > { %v335_v18 = vmul.f32 0.7978846, %v334_v16 }
 0x126   : > { %604 = vtanh.f32 %v335_v18 }
 0x12c   : > { %v605_v19 = vpop.eup %604 }
 0x12d   : > { %v337_v21 = vadd.f32 1.0, %v605_v19 }
 0x12f   : > { %v338_v22 = vmul.f32 %v337_v21, %v330_v20 }
 0x131   : > { %v339_v23 = vpack.c.bf16 %v338_v22, %v338_v22 }
 0x133   : > { %521 = vmatmul.msk.bf16.vlgmr.msra.gmra.mxu1 %vm313_vm2, %v339_v23 }
 0x1b0   : > { %v368_v24 = vpop.f32.mrf.mxu1 }
 0x1b1   : > { %372 = vst.msk [vmem:[%s276_s7] sm:$0xff] %vm313_vm2, %v368_v24 }
 0x1b2   : > { %723 = shalt.err (!%p720_p8)
}
 0x1b3   : > { %542 = dma.vmem_to_hbm [thread:$0]  (%p842_p5), %s387_s9, 128, %s389_s8, %s374_s30  }
 0x1b8   : > { %v370_v25 = vpop.f32.mrf.mxu1 }
 0x1b9 PF: > { %p564_p9 = scmp.ge.s32.totalorder %s766_s21, 2  ;;  %s400_s16 = sand.u32 1, %s754_s18  }
 0x1ba   : > { %s401_s17 = scalar_lea.sflag [#allocation4], %s400_s16 }
 0x1bb   : > { %p555_p10 = pnand %p564_p9, %p846_p6 }
 0x1bd   : > { %p556_p11 = pneg %p555_p10 }
 0x1bf   : > { %749 = dma.done.wait (%p556_p11), %s401_s17, 128  }
 0x1c0   : > { %751 = vsyncadd (%p556_p11), %s401_s17, 4294967168  ;;  %p17_p12 = scmp.ge.s32.totalorder %s829_s24, 4   ;;  %s943_s18 = smov %s758_s19 }
 0x1c1   : > { %s944_s19 = smov %s762_s20  ;;  %s945_s20 = smov %s840_s27 }
 0x1c2   : > { %s946_s21 = smov %s829_s24  ;;  %19 = sbr.rel (!%p17_p12) target bundleno = 5 (0x5), region = 91 }
 0x1c7   :  { %407 = vsyncpa [#allocation3], 1 }
 0x1c8   :  { %409 = vsyncpa [#allocation3 + $0x1], 1 }
 0x1c9   :  { %410 = vsyncpa [#allocation6], 1 }
 0x1ca   :  { %411 = vsyncpa [#allocation4], 1 }
 0x1cb   :  { %413 = vsyncpa [#allocation4 + $0x1], 1 }

</bundles_post_ra>
